<compile_context>
chip_gen: v5e
topology: v5e:2x2
jax: 0.10.0
libtpu: 0.0.40
codegen_flags: <defaults>
</compile_context>

<pallas_src>
import functools

import jax
import jax.numpy as jnp
from jax.experimental import pallas as pl
from jax.experimental.pallas import tpu as pltpu


# ----------------------------------------------------------------------------
# helpers
# ----------------------------------------------------------------------------
def _round_up(n, m):
    return -(-n // m) * m


def _vmem_capacity_bytes():
    try:
        info = pltpu.get_tpu_info()
        return int(getattr(info, "vmem_capacity_bytes", 64 << 20))
    except Exception:
        return 64 << 20  # conservative (v7x-class) if the query is unavailable


def _gen_budgets(vmem_cap):
    """(per-tile budget, vmem_limit cap) chosen per TPU generation."""
    if vmem_cap <= (64 << 20):       # v7x-class: 64 MiB physical VMEM per core
        return 8 << 20, 56 << 20
    return 14 << 20, 100 << 20       # v5e / v6e: 128 MiB physical VMEM


def _choose_tb(B, per_batch_bytes, tile_budget_bytes):
    """Batch-tile size: as large as the budget allows, but keep >= 2 grid steps
    (both v7x TensorCores busy) and >= 4 steps while tiles stay >= ~2 MiB."""
    tb = min(B, max(1, tile_budget_bytes // max(per_batch_bytes, 1)))
    if B >= 2:
        tb = min(tb, -(-B // 2))
    while (-(-B // tb)) < 4 and tb > 1 and ((tb + 1) // 2) * per_batch_bytes >= (2 << 20):
        tb = (tb + 1) // 2
    return tb


# ----------------------------------------------------------------------------
# kernels
# ----------------------------------------------------------------------------
def _se_fused_kernel(x_ref, w1_ref, w2_ref, o_ref):
    # x_ref: (TB, C, HW) block in the input dtype (no f32 copy of the tile).
    x = x_ref[...]
    hw = x.shape[-1]

    # squeeze: global average pool over the spatial (lane) axis, f32 accumulation.
    pooled = jnp.sum(x, axis=-1, dtype=jnp.float32) * (1.0 / hw)         # (TB, C)

    # excitation: Linear -> ReLU -> Linear -> Sigmoid, batched over TB.
    h = jnp.maximum(
        jnp.dot(pooled, w1_ref[...], preferred_element_type=jnp.float32), 0.0)
    y = jax.nn.sigmoid(
        jnp.dot(h, w2_ref[...], preferred_element_type=jnp.float32))     # (TB, C)

    # scale: multiply in the output dtype (no f32 tile materialization).
    o_ref[...] = x * y.astype(o_ref.dtype)[:, :, None]


def _se_gate_kernel(x_ref, w1_ref, w2_ref, y_ref, sum_ref, *, hw_total, hw_chunk):
    # Streaming pass 1: accumulate f32 channel sums across HW chunks, emit the
    # excitation gate (1, C, 1) at the last chunk.  Ragged tail chunk is masked.
    hidx = pl.program_id(1)

    @pl.when(hidx == 0)
    def _():
        sum_ref[...] = jnp.zeros_like(sum_ref)

    x = x_ref[...]                                                       # (1, C, HWC)
    lane = jax.lax.broadcasted_iota(jnp.int32, x.shape, 2)
    valid = hw_total - hidx * hw_chunk                                   # scalar
    xm = jnp.where(lane < valid, x, jnp.zeros_like(x))
    sum_ref[...] += jnp.sum(xm, axis=-1, dtype=jnp.float32)              # (1, C)

    @pl.when(hidx == pl.num_programs(1) - 1)
    def _():
        pooled = sum_ref[...] * (1.0 / hw_total)                          # (1, C)
        h = jnp.maximum(
            jnp.dot(pooled, w1_ref[...], preferred_element_type=jnp.float32), 0.0)
        y = jax.nn.sigmoid(
            jnp.dot(h, w2_ref[...], preferred_element_type=jnp.float32))  # (1, C)
        y_ref[...] = y.astype(y_ref.dtype)[:, :, None]                    # (1, C, 1)


def _se_scale_kernel(x_ref, y_ref, o_ref):
    # Streaming pass 2: elementwise scale, gate already laid out as (1, C, 1).
    o_ref[...] = x_ref[...] * y_ref[...].astype(o_ref.dtype)


# ----------------------------------------------------------------------------
# wrapper
# ----------------------------------------------------------------------------
def se_layer(x, w1, w2, *, tile_budget_bytes=None, donate_x=False, interpret=False):
    """SELayer forward.

    x : (B, C, H, W)
    w1: (C_red, C)  -- torch nn.Linear(channel, channel//reduction, bias=False).weight
    w2: (C, C_red)  -- torch nn.Linear(channel//reduction, channel, bias=False).weight
    donate_x: set True only if the caller donates x (adds input_output_aliases={0:0}).
    """
    B, C, H, W = x.shape
    HW = H * W
    C_red = w1.shape[0]
    assert w1.shape == (C_red, C) and w2.shape == (C, C_red)

    x_flat = x.reshape(B, C, HW)
    w1_t = jnp.transpose(w1)   # (C, C_red):  y = pooled @ W1^T
    w2_t = jnp.transpose(w2)   # (C_red, C)

    itemsize = jnp.dtype(x.dtype).itemsize
    sublane_pack = 8 * max(1, 4 // itemsize)           # 8 (f32) / 16 (bf16) / 32 (int8)
    c_pad = _round_up(C, sublane_pack)
    hw_pad = _round_up(HW, 128)
    # VMEM footprint of one batch element's tile, including sublane/lane padding.
    per_batch_bytes = c_pad * hw_pad * itemsize

    vmem_cap = _vmem_capacity_bytes()
    default_budget, vmem_cap_limit = _gen_budgets(vmem_cap)
    budget = default_budget if tile_budget_bytes is None else int(tile_budget_bytes)

    weight_bytes = (w1_t.size + w2_t.size) * jnp.dtype(w1_t.dtype).itemsize
    transcendentals = B * C
    io_aliases = {0: 0} if donate_x else {}

    if per_batch_bytes <= budget:
        # -------------------- fused single-pass path --------------------
        TB = _choose_tb(B, per_batch_bytes, budget)
        nb = pl.cdiv(B, TB)                         # partial last batch block is OK
        tile_bytes = TB * per_batch_bytes
        vmem_need = 2 * 2 * tile_bytes + 2 * 2 * weight_bytes + (2 << 20)
        vmem_limit = int(min(max(vmem_need, 16 << 20), vmem_cap_limit))

        out_flat = pl.pallas_call(
            _se_fused_kernel,
            out_shape=jax.ShapeDtypeStruct((B, C, HW), x.dtype),
            grid_spec=pltpu.PrefetchScalarGridSpec(
                num_scalar_prefetch=0,
                grid=(nb,),
                in_specs=[
                    pl.BlockSpec((TB, C, HW), lambda b: (b, 0, 0)),
                    pl.BlockSpec(w1_t.shape, lambda b: (0, 0)),
                    pl.BlockSpec(w2_t.shape, lambda b: (0, 0)),
                ],
                out_specs=pl.BlockSpec((TB, C, HW), lambda b: (b, 0, 0)),
            ),
            compiler_params=pltpu.CompilerParams(
                # plain "parallel" shards the batch axis across v7x's 2 TensorCores;
                # pltpu.CORE_PARALLEL is an alternative if the toolchain needs it.
                dimension_semantics=("parallel",),
                vmem_limit_bytes=vmem_limit),
            cost_estimate=pl.CostEstimate(
                flops=4 * B * C * C_red + 2 * B * C * HW,
                transcendentals=transcendentals,
                bytes_accessed=2 * x_flat.size * itemsize + 2 * weight_bytes),
            input_output_aliases=io_aliases,
            interpret=interpret,
        )(x_flat, w1_t, w2_t)
        return out_flat.reshape(B, C, H, W)

    # ------------------ streaming two-pass path (large C*HW) ------------------
    hwc = max(128, (budget // max(c_pad * itemsize, 1)) // 128 * 128)
    hwc = min(hwc, hw_pad)
    nh = pl.cdiv(HW, hwc)
    chunk_bytes = c_pad * hwc * itemsize
    vmem_need = 2 * 2 * chunk_bytes + 2 * 2 * weight_bytes + (2 << 20)
    vmem_limit = int(min(max(vmem_need, 16 << 20), vmem_cap_limit))

    # Pass 1: pooled sums + excitation gate (f32, shape (B, C, 1)).
    gate = pl.pallas_call(
        functools.partial(_se_gate_kernel, hw_total=HW, hw_chunk=hwc),
        out_shape=jax.ShapeDtypeStruct((B, C, 1), jnp.float32),
        grid_spec=pltpu.PrefetchScalarGridSpec(
            num_scalar_prefetch=0,
            grid=(B, nh),                       # reduction (HW-chunk) axis last
            in_specs=[
                pl.BlockSpec((1, C, hwc), lambda b, h: (b, 0, h)),
                pl.BlockSpec(w1_t.shape, lambda b, h: (0, 0)),
                pl.BlockSpec(w2_t.shape, lambda b, h: (0, 0)),
            ],
            out_specs=pl.BlockSpec((1, C, 1), lambda b, h: (b, 0, 0)),
            scratch_shapes=[pltpu.VMEM((1, C), jnp.float32)],
        ),
        compiler_params=pltpu.CompilerParams(
            dimension_semantics=("parallel", "arbitrary"),
            vmem_limit_bytes=vmem_limit),
        cost_estimate=pl.CostEstimate(
            flops=4 * B * C * C_red + B * C * HW,
            transcendentals=transcendentals,
            bytes_accessed=x_flat.size * itemsize + 2 * weight_bytes + B * C * 4),
        interpret=interpret,
    )(x_flat, w1_t, w2_t)

    # Pass 2: stream the same HW chunks and scale by the gate.
    out_flat = pl.pallas_call(
        _se_scale_kernel,
        out_shape=jax.ShapeDtypeStruct((B, C, HW), x.dtype),
        grid_spec=pltpu.PrefetchScalarGridSpec(
            num_scalar_prefetch=0,
            grid=(B, nh),
            in_specs=[
                pl.BlockSpec((1, C, hwc), lambda b, h: (b, 0, h)),
                pl.BlockSpec((1, C, 1), lambda b, h: (b, 0, 0)),
            ],
            out_specs=pl.BlockSpec((1, C, hwc), lambda b, h: (b, 0, h)),
        ),
        compiler_params=pltpu.CompilerParams(
            dimension_semantics=("parallel", "parallel"),
            vmem_limit_bytes=vmem_limit),
        cost_estimate=pl.CostEstimate(
            flops=B * C * HW,
            transcendentals=0,
            bytes_accessed=2 * x_flat.size * itemsize + B * C * 4),
        input_output_aliases=io_aliases,
        interpret=interpret,
    )(x_flat, gate)
    return out_flat.reshape(B, C, H, W)


# ----------------------------------------------------------------------------
# self-test
# ----------------------------------------------------------------------------
def _reference(x, w1, w2):
    pooled = jnp.mean(x, axis=(2, 3))                          # (B, C)
    h = jnp.maximum(pooled @ w1.T, 0.0)                        # (B, C_red)
    y = jax.nn.sigmoid(h @ w2.T)                               # (B, C)
    return x * y[:, :, None, None]


if __name__ == "__main__":
    key = jax.random.PRNGKey(0)

    # Test 1: nominal small shape -> fused single-pass path.
    B, C, H, W, red = 2, 6, 16, 16, 3
    k1, k2, k3, key = jax.random.split(key, 4)
    x = jax.random.normal(k1, (B, C, H, W), dtype=jnp.float32)
    w1 = jax.random.normal(k2, (C // red, C), dtype=jnp.float32) * 0.1
    w2 = jax.random.normal(k3, (C, C // red), dtype=jnp.float32) * 0.1
    out = jax.block_until_ready(se_layer(x, w1, w2))
    assert out.shape == (B, C, H, W)
    assert jnp.allclose(out, _reference(x, w1, w2), atol=1e-5, rtol=1e-5), "test1 mismatch"

    # Test 2: odd batch -> partial last batch block via cdiv grid (fused path).
    B2, C2, H2, W2, red2 = 3, 8, 12, 12, 4
    k1, k2, k3, key = jax.random.split(key, 4)
    x2 = jax.random.normal(k1, (B2, C2, H2, W2), dtype=jnp.float32)
    w1b = jax.random.normal(k2, (C2 // red2, C2), dtype=jnp.float32) * 0.1
    w2b = jax.random.normal(k3, (C2, C2 // red2), dtype=jnp.float32) * 0.1
    out2 = jax.block_until_ready(se_layer(x2, w1b, w2b))
    assert jnp.allclose(out2, _reference(x2, w1b, w2b), atol=1e-5, rtol=1e-5), "test2 mismatch"

    # Test 3: force the streaming two-pass path (tiny tile budget) with a ragged
    # HW tail (144 = 128 + 16) to exercise the masked accumulation.
    out3 = jax.block_until_ready(se_layer(x2, w1b, w2b, tile_budget_bytes=4096))
    assert jnp.allclose(out3, _reference(x2, w1b, w2b), atol=1e-5, rtol=1e-5), "test3 mismatch"

    print("KERNEL_OK")
</pallas_src>

<mosaic_0001>
module attributes {stable_mosaic.version = 11 : i64} {
  func.func @_se_fused_kernel(%arg0: i32, %arg1: memref<1x6x256xf32, #tpu.memory_space<vmem>>, %arg2: memref<6x2xf32, #tpu.memory_space<vmem>>, %arg3: memref<2x6xf32, #tpu.memory_space<vmem>>, %arg4: memref<1x6x256xf32, #tpu.memory_space<vmem>>) attributes {dimension_semantics = [#tpu.dimension_semantics<parallel>], iteration_bounds = array<i64: 2>, scalar_prefetch = 0 : i64, scratch_operands = 0 : i64, tpu.core_type = #tpu.core_type<tc>, window_params = [{transform_indices = @transform_0, window_bounds = array<i64: 1, 6, 256>}, {pipeline_mode = #tpu.pipeline_mode<synchronous>, transform_indices = @transform_1, window_bounds = array<i64: 6, 2>}, {pipeline_mode = #tpu.pipeline_mode<synchronous>, transform_indices = @transform_2, window_bounds = array<i64: 2, 6>}, {transform_indices = @transform_3, window_bounds = array<i64: 1, 6, 256>}]} {
    %c0 = arith.constant 0 : index
    %c0_0 = arith.constant 0 : index
    %c0_1 = arith.constant 0 : index
    %0 = vector.load %arg1[%c0, %c0_0, %c0_1] : memref<1x6x256xf32, #tpu.memory_space<vmem>>, vector<1x6x256xf32>
    %cst = arith.constant dense<0.000000e+00> : vector<1x6xf32>
    %1 = vector.multi_reduction <add>, %0, %cst [2] : vector<1x6x256xf32> to vector<1x6xf32>
    %cst_2 = arith.constant 3.906250e-03 : f32
    %2 = vector.broadcast %cst_2 : f32 to vector<1x6xf32>
    %3 = arith.mulf %1, %2 : vector<1x6xf32>
    %c0_3 = arith.constant 0 : index
    %c0_4 = arith.constant 0 : index
    %4 = vector.load %arg2[%c0_3, %c0_4] : memref<6x2xf32, #tpu.memory_space<vmem>>, vector<6x2xf32>
    %cst_5 = arith.constant dense<0.000000e+00> : vector<1x2xf32>
    %5 = tpu.matmul %3, %4, %cst_5 {dimension_numbers = #tpu.dot_dimension_numbers<[1], [0], [0], [1], [0, 0, 1, 1], [], []>} : vector<1x6xf32>, vector<6x2xf32>, vector<1x2xf32> -> vector<1x2xf32>
    %cst_6 = arith.constant 0.000000e+00 : f32
    %6 = vector.broadcast %cst_6 : f32 to vector<1x2xf32>
    %7 = arith.maximumf %5, %6 : vector<1x2xf32>
    %c0_7 = arith.constant 0 : index
    %c0_8 = arith.constant 0 : index
    %8 = vector.load %arg3[%c0_7, %c0_8] : memref<2x6xf32, #tpu.memory_space<vmem>>, vector<2x6xf32>
    %cst_9 = arith.constant dense<0.000000e+00> : vector<1x6xf32>
    %9 = tpu.matmul %7, %8, %cst_9 {dimension_numbers = #tpu.dot_dimension_numbers<[1], [0], [0], [1], [0, 0, 1, 1], [], []>} : vector<1x2xf32>, vector<2x6xf32>, vector<1x6xf32> -> vector<1x6xf32>
    %10 = arith.negf %9 : vector<1x6xf32>
    %11 = math.exp %10 : vector<1x6xf32>
    %cst_10 = arith.constant 1.000000e+00 : f32
    %12 = vector.broadcast %cst_10 : f32 to vector<1x6xf32>
    %13 = arith.addf %12, %11 : vector<1x6xf32>
    %14 = arith.divf %12, %13 : vector<1x6xf32>
    %15 = vector.shape_cast %14 : vector<1x6xf32> to vector<1x6x1xf32>
    %16 = vector.broadcast %15 : vector<1x6x1xf32> to vector<1x6x256xf32>
    %17 = arith.mulf %0, %16 : vector<1x6x256xf32>
    %c0_11 = arith.constant 0 : index
    %c0_12 = arith.constant 0 : index
    %c0_13 = arith.constant 0 : index
    %18 = vector.load %arg4[%c0_11, %c0_12, %c0_13] : memref<1x6x256xf32, #tpu.memory_space<vmem>>, vector<1x6x256xf32>
    tpu.vector_store %arg4[%c0_11, %c0_12, %c0_13], %17 {strides = array<i32>} : memref<1x6x256xf32, #tpu.memory_space<vmem>>, vector<1x6x256xf32>,
    return
  }
  func.func @transform_0(%arg0: i32) -> (i32, i32, i32) {
    %c0_i32 = arith.constant 0 : i32
    %c0_i32_0 = arith.constant 0 : i32
    %c0_i32_1 = arith.constant 0 : i32
    return %arg0, %c0_i32, %c0_i32_0 : i32, i32, i32
  }
  func.func @transform_1(%arg0: i32) -> (i32, i32) {
    %c0_i32 = arith.constant 0 : i32
    %c0_i32_0 = arith.constant 0 : i32
    %c0_i32_1 = arith.constant 0 : i32
    return %c0_i32, %c0_i32_0 : i32, i32
  }
  func.func @transform_2(%arg0: i32) -> (i32, i32) {
    %c0_i32 = arith.constant 0 : i32
    %c0_i32_0 = arith.constant 0 : i32
    %c0_i32_1 = arith.constant 0 : i32
    return %c0_i32, %c0_i32_0 : i32, i32
  }
  func.func @transform_3(%arg0: i32) -> (i32, i32, i32) {
    %c0_i32 = arith.constant 0 : i32
    %c0_i32_0 = arith.constant 0 : i32
    %c0_i32_1 = arith.constant 0 : i32
    return %arg0, %c0_i32, %c0_i32_0 : i32, i32, i32
  }
}

</mosaic_0001>

<bundles_post_ra>
// kernel: tpu_custom_call.1
= control target key start
LH: loop header
LB: loop body
LE: loop exit
PB: predicated region body
PF: predicated region fallthrough
CT: control target
= control target key end

     0   :  { %s385_s12 = smov 0   ;;  %s415_s0 = inlined_call_operand.vmem [shape: f32[2,6,256], index: 0, kind: input, shape index: {}]   ;;  %s416_s1 = inlined_call_operand.vmem [shape: f32[6,2], index: 1, kind: input, shape index: {}]   ;;  %s417_s2 = inlined_call_operand.vmem [shape: f32[2,6], index: 2, kind: input, shape index: {}]   ;;  %s418_s3 = inlined_call_operand.vmem [shape: f32[2,6,256], index: 3, kind: output, shape index: {}]  }
   0x1 LB: > { %s326_s13 = sadd.s32 4294967295, %s363_s12   ;;  %p330_p0 = scmp.ge.s32.totalorder %s363_s12, 1  ;;  %s363_s12 = sphi %s385_s12, %s13_s12  }
   0x2   : > { %p137_p1 = scmp.lt.s32.totalorder %s363_s12, 3 }
   0x4   : > { %p138_p2 = pnand %p330_p0, %p137_p1 }
   0x5   : > { %p161_p3 = scmp.lt.s32.totalorder (!%p138_p2), %s326_s13, 1 }
   0x6   : > { %141 = sbr.rel (%p138_p2) target bundleno = 541 (0x21d), region = 32 }
   0xb   : > { %s420_s13 = smov (!%p161_p3, %s326_s13), 1  ;;  %vm173_vm0 = vcmask 1045504   ;;  %v180_v5 = vld [vmem:[%s416_s1] sm:$0x3f]  ;;  %v182_v6 = vlaneseq  ;;  %vm185_vm1 = vcmask 48128   ;;  %vm217_vm2 = vcmask 1041408  }
   0xc   : > { %s342_s14 = sshll.u32 %s420_s13, 4  ;;  %335 = vmatpush.msk.msra.mxu0 %vm173_vm0, %v180_v5  ;;  %v212_v11 = vld [vmem:[%s417_s2] sm:$0x3]  ;;  %vm213_vm3 = vcmask 15360  }
   0xd   : > { %s165_s17 = scalar_lea.vmem %s415_s0, %s342_s14  ;;  %v183_v7 = vand.u32 127, %v182_v6  ;;  %337 = vmatpush.msk.msra.mxu1 %vm217_vm2, %v212_v11  ;;  %v262_v14 = vshrl.u32 %v182_v6, 7  ;;  %s170_s24 = scalar_lea.vmem %s418_s3, %s342_s14 }
   0xe   : > { %v171_v0 = vld [vmem:[%s165_s17] sm:$0x3f]  ;;  %v172_v1 = vld [vmem:[%s165_s17 + $0x8] sm:$0x3f] }
   0xf   : > { %v174_v2 = vsel %vm173_vm0, %v171_v0, 0.0  ;;  %v175_v3 = vsel %vm173_vm0, %v172_v1, 0.0  ;;  %352 = vset.pattern.permute.xlu0 %v262_v14 }
  0x10   : > { %v176_v4 = vadd.f32 %v175_v3, %v174_v2 }
  0x12   : > { %177 = vadd.xlane.f32.xlu0 %v176_v4 }
  0x85   : > { %v178_v8 = vpop.xlane.xlu0 %177 }
  0x86   : > { %v179_v9 = vmul.f32 0.00390625, %v178_v8 }
  0x88   : > { %v184_v10 = vperm.slane %v179_v9, %v183_v7 }
  0x8a   : > { %336 = vmatmul.msk.f32.vlgmr.msra.gmra.mxu0 %vm185_vm1, %v184_v10 }
 0x107   : > { %v208_v12 = vpop.f32.mrf.mxu0 }
 0x108   : > { %v211_v13 = vmax.f32 %v208_v12, 0.0 }
 0x10a   : > { %338 = vmatmul.msk.f32.vlgmr.msra.gmra.mxu1 %vm213_vm3, %v211_v13 }
 0x187   : > { %v238_v15 = vpop.f32.mrf.mxu1 }
 0x188   : > { %v339_v16 = vmul.f32 -1.442695, %v238_v15 }
 0x18a   : > { %353 = vpow2.f32 %v339_v16 }
 0x190   : > { %v354_v17 = vpop.eup %353 }
 0x191   : > { %v244_v18 = vadd.f32 1.0, %v354_v17 }
 0x193   : > { %355 = vrcp.f32 %v244_v18  ;;  %v256_v22 = vand.u32 2147483648, %v244_v18  ;;  %v254_v24 = vand.u32 2147483647, %v244_v18  ;;  %vm250_vm5 = vweird.f32 %v244_v18 }
 0x195   : > { %v257_v26 = vor.u32 1.1754944e-38, %v256_v22  ;;  %vm255_vm7 = vcmp.eq.f32.partialorder %v254_v24, 8.507059e+37 }
 0x199   : > { %v356_v19 = vpop.eup %355 }
 0x19a   : > { %v246_v20 = vmul.f32 %v356_v19, %v244_v18  ;;  %vm251_vm4 = vweird.f32 %v356_v19 }
 0x19b   : > { %vm252_vm6 = vmor %vm250_vm5, %vm251_vm4 }
 0x19c   : > { %v247_v21 = vsub.f32 1.0, %v246_v20 }
 0x19e   : > { %v248_v23 = vmul.f32 %v356_v19, %v247_v21 }
 0x1a0   : > { %v249_v25 = vadd.f32 %v356_v19, %v248_v23 }
 0x1a2   : > { %v253_v27 = vsel %vm252_vm6, %v356_v19, %v249_v25 }
 0x1a3   : > { %v258_v28 = vsel %vm255_vm7, %v257_v26, %v253_v27 }
 0x1a4   : > { %v260_v29 = vperm.slane %v258_v28, 0 }
 0x1a6   : > { %265 = vperm.xlu0 %352, %v260_v29  }
 0x218   : > { %v266_v30 = vpop.permute.xlu0 %265 }
 0x219   : > { %v267_v31 = vmul.f32 %v266_v30, %v171_v0  ;;  %v268_v32 = vmul.f32 %v266_v30, %v172_v1 }
 0x21b   : > { %269 = vst [vmem:[%s170_s24] sm:$0x3f] %v267_v31 }
 0x21c   : > { %270 = vst [vmem:[%s170_s24 + $0x8] sm:$0x3f] %v268_v32 }
 0x21d PF: > { %s13_s12 = sadd.s32 1, %s363_s12  }
 0x21e   : > { %p10_p4 = scmp.ge.s32.totalorder %s13_s12, 4  }
 0x220   :  { %12 = sbr.rel (!%p10_p4) target bundleno = 1 (0x1), region = 62 }

</bundles_post_ra>
